<compile_context>
chip_gen: v6e
topology: v6e:2x2x1
jax: 0.10.0
libtpu: 0.0.40
codegen_flags: <defaults>
</compile_context>

<pallas_src>
import jax
import jax.numpy as jnp
from jax.experimental import pallas as pl
from jax.experimental.pallas import tpu as pltpu

_IN, _HID, _OUT = 9, 30, 2
_NUM_LAYERS = 8


def _mlp_kernel(x_ref,
                w1_ref, b1_ref, w2_ref, b2_ref, w3_ref, b3_ref, w4_ref, b4_ref,
                w5_ref, b5_ref, w6_ref, b6_ref, w7_ref, b7_ref, w8_ref, b8_ref,
                o_ref):
    x = x_ref[...].astype(jnp.float32)

    def linear(h, w_ref, b_ref):
        # bf16 operands feed the MXU natively; accumulate in f32, add f32 bias.
        return (jnp.dot(h.astype(jnp.bfloat16), w_ref[...],
                        preferred_element_type=jnp.float32)
                + b_ref[...])

    h = jnp.maximum(linear(x, w1_ref, b1_ref), 0.0)   # fc1 + relu
    h = jnp.maximum(linear(h, w2_ref, b2_ref), 0.0)   # fc2 + relu
    # dropout1: identity in eval mode
    h = jnp.maximum(linear(h, w3_ref, b3_ref), 0.0)   # fc3 + relu
    h = jnp.maximum(linear(h, w4_ref, b4_ref), 0.0)   # fc4 + relu
    # dropout1: identity in eval mode
    h = jnp.maximum(linear(h, w5_ref, b5_ref), 0.0)   # fc5 + relu
    h = jnp.maximum(linear(h, w6_ref, b6_ref), 0.0)   # fc6 + relu
    # dropout1: identity in eval mode
    h = jnp.maximum(linear(h, w7_ref, b7_ref), 0.0)   # fc7 + relu
    logits = linear(h, w8_ref, b8_ref)                # fc8

    # 2-way softmax == sigmoid of the logit difference (numerically stable form).
    d = logits[:, 1:2] - logits[:, 0:1]
    e = jnp.exp(-jnp.abs(d))                              # EUP exp
    p = pl.reciprocal(1.0 + e, approx=True)               # EUP vrcp (free slot)
    p1 = jnp.where(d >= 0.0, p, 1.0 - p)
    p0 = 1.0 - p1                                          # rows sum to 1 exactly
    o_ref[:, 0:1] = p0.astype(o_ref.dtype)
    o_ref[:, 1:2] = p1.astype(o_ref.dtype)
    # TODO(synk): output last-dim = 2 -> lane-sparse (masked) stores; pack rows
    # into a lane-dense slab only if writeback ever shows up in a trace.


def _round_up(n, m):
    return ((n + m - 1) // m) * m


def mymodule4_forward(x, params, *, block_rows=512):
    """x: [B, 9] float32; params: w{i} [in,out] bf16, b{i} [1,out] f32."""
    B = x.shape[0]
    # Row tile: multiple of 8 (sublane), capped so per-step VMEM stays small
    # (safe for v7x's 64 MiB physical / 32 MiB default scoped VMEM).
    tm = min(block_rows, _round_up(B, 8))
    B_pad = _round_up(B, tm)
    if B_pad != B:
        x = jnp.pad(x, ((0, B_pad - B), (0, 0)))
    num_blocks = B_pad // tm

    args = [x]
    for i in range(1, _NUM_LAYERS + 1):
        args.append(params[f"w{i}"])
        args.append(params[f"b{i}"])

    def _row_map(i):
        return (i, 0)

    def _const_map(i):
        return (0, 0)

    in_specs = [pl.BlockSpec((tm, _IN), _row_map)]
    for a in args[1:]:
        # full (constant-index) block: stays VMEM-resident across grid steps
        in_specs.append(pl.BlockSpec(a.shape, _const_map))
    out_spec = pl.BlockSpec((tm, _OUT), _row_map)

    flops = 2 * B_pad * (_IN * _HID + 6 * _HID * _HID + _HID * _OUT)
    weight_bytes = sum(int(params[f"w{i}"].size) * 2 + int(params[f"b{i}"].size) * 4
                       for i in range(1, _NUM_LAYERS + 1))
    cost = pl.CostEstimate(
        flops=flops,
        transcendentals=2 * B_pad,                       # exp + reciprocal per row
        bytes_accessed=B_pad * (_IN * 4 + _OUT * 4) + weight_bytes,
    )

    out = pl.pallas_call(
        _mlp_kernel,
        out_shape=jax.ShapeDtypeStruct((B_pad, _OUT), jnp.float32),
        grid=(num_blocks,),
        in_specs=in_specs,
        out_specs=out_spec,
        compiler_params=pltpu.CompilerParams(
            dimension_semantics=("parallel",)),          # 2x on v7x megacore
        cost_estimate=cost,
    )(*args)
    return out[:B]


def init_params(key):
    """Deterministic init mimicking PyTorch nn.Linear default U(-1/sqrt(fan_in), +)."""
    dims = [(_IN, _HID)] + [(_HID, _HID)] * 6 + [(_HID, _OUT)]
    params = {}
    for i, (fan_in, fan_out) in enumerate(dims, start=1):
        key, kw, kb = jax.random.split(key, 3)
        bound = 1.0 / jnp.sqrt(float(fan_in))
        # stored [in, out] (transposed vs. PyTorch's [out, in]) for x @ W; bf16 for MXU
        w = jax.random.uniform(kw, (fan_in, fan_out), jnp.float32,
                               minval=-bound, maxval=bound)
        b = jax.random.uniform(kb, (1, fan_out), jnp.float32,
                               minval=-bound, maxval=bound)
        params[f"w{i}"] = w.astype(jnp.bfloat16)
        params[f"b{i}"] = b
    return params


def _reference_forward(x, params):
    """Pure-JAX reference with the same bf16-operand / f32-accumulate numerics."""
    h = x.astype(jnp.float32)
    for i in range(1, _NUM_LAYERS):
        h = jnp.maximum(
            jnp.dot(h.astype(jnp.bfloat16), params[f"w{i}"],
                    preferred_element_type=jnp.float32) + params[f"b{i}"], 0.0)
    logits = jnp.dot(h.astype(jnp.bfloat16), params[f"w{_NUM_LAYERS}"],
                     preferred_element_type=jnp.float32) + params[f"b{_NUM_LAYERS}"]
    return jax.nn.softmax(logits, axis=-1)


if __name__ == "__main__":
    key = jax.random.PRNGKey(0)
    key, kx = jax.random.split(key)
    B = 8
    x = jax.random.normal(kx, (B, _IN), jnp.float32)
    params = init_params(key)

    out = mymodule4_forward(x, params)
    out = jax.block_until_ready(out)

    ref = _reference_forward(x, params)
    assert out.shape == (B, _OUT)
    # approx=True reciprocal is not bit-identical -> modest tolerance
    assert jnp.allclose(out, ref, atol=2e-3, rtol=2e-3), "mismatch vs JAX reference"
    assert jnp.allclose(jnp.sum(out, axis=-1), 1.0, atol=1e-5), "softmax rows must sum to 1"

    print("KERNEL_OK")
</pallas_src>

<mosaic_0001>
module attributes {stable_mosaic.version = 11 : i64} {
  func.func @_mlp_kernel(%arg0: i32, %arg1: memref<8x9xf32, #tpu.memory_space<vmem>>, %arg2: memref<9x30xbf16, #tpu.memory_space<vmem>>, %arg3: memref<1x30xf32, #tpu.memory_space<vmem>>, %arg4: memref<30x30xbf16, #tpu.memory_space<vmem>>, %arg5: memref<1x30xf32, #tpu.memory_space<vmem>>, %arg6: memref<30x30xbf16, #tpu.memory_space<vmem>>, %arg7: memref<1x30xf32, #tpu.memory_space<vmem>>, %arg8: memref<30x30xbf16, #tpu.memory_space<vmem>>, %arg9: memref<1x30xf32, #tpu.memory_space<vmem>>, %arg10: memref<30x30xbf16, #tpu.memory_space<vmem>>, %arg11: memref<1x30xf32, #tpu.memory_space<vmem>>, %arg12: memref<30x30xbf16, #tpu.memory_space<vmem>>, %arg13: memref<1x30xf32, #tpu.memory_space<vmem>>, %arg14: memref<30x30xbf16, #tpu.memory_space<vmem>>, %arg15: memref<1x30xf32, #tpu.memory_space<vmem>>, %arg16: memref<30x2xbf16, #tpu.memory_space<vmem>>, %arg17: memref<1x2xf32, #tpu.memory_space<vmem>>, %arg18: memref<8x2xf32, #tpu.memory_space<vmem>>) attributes {dimension_semantics = [#tpu.dimension_semantics<parallel>], iteration_bounds = array<i64: 1>, scalar_prefetch = 0 : i64, scratch_operands = 0 : i64, tpu.core_type = #tpu.core_type<tc>, window_params = [{transform_indices = @transform_0, window_bounds = array<i64: 8, 9>}, {pipeline_mode = #tpu.pipeline_mode<synchronous>, transform_indices = @transform_1, window_bounds = array<i64: 9, 30>}, {pipeline_mode = #tpu.pipeline_mode<synchronous>, transform_indices = @transform_2, window_bounds = array<i64: 1, 30>}, {pipeline_mode = #tpu.pipeline_mode<synchronous>, transform_indices = @transform_3, window_bounds = array<i64: 30, 30>}, {pipeline_mode = #tpu.pipeline_mode<synchronous>, transform_indices = @transform_4, window_bounds = array<i64: 1, 30>}, {pipeline_mode = #tpu.pipeline_mode<synchronous>, transform_indices = @transform_5, window_bounds = array<i64: 30, 30>}, {pipeline_mode = #tpu.pipeline_mode<synchronous>, transform_indices = @transform_6, window_bounds = array<i64: 1, 30>}, {pipeline_mode = #tpu.pipeline_mode<synchronous>, transform_indices = @transform_7, window_bounds = array<i64: 30, 30>}, {pipeline_mode = #tpu.pipeline_mode<synchronous>, transform_indices = @transform_8, window_bounds = array<i64: 1, 30>}, {pipeline_mode = #tpu.pipeline_mode<synchronous>, transform_indices = @transform_9, window_bounds = array<i64: 30, 30>}, {pipeline_mode = #tpu.pipeline_mode<synchronous>, transform_indices = @transform_10, window_bounds = array<i64: 1, 30>}, {pipeline_mode = #tpu.pipeline_mode<synchronous>, transform_indices = @transform_11, window_bounds = array<i64: 30, 30>}, {pipeline_mode = #tpu.pipeline_mode<synchronous>, transform_indices = @transform_12, window_bounds = array<i64: 1, 30>}, {pipeline_mode = #tpu.pipeline_mode<synchronous>, transform_indices = @transform_13, window_bounds = array<i64: 30, 30>}, {pipeline_mode = #tpu.pipeline_mode<synchronous>, transform_indices = @transform_14, window_bounds = array<i64: 1, 30>}, {pipeline_mode = #tpu.pipeline_mode<synchronous>, transform_indices = @transform_15, window_bounds = array<i64: 30, 2>}, {pipeline_mode = #tpu.pipeline_mode<synchronous>, transform_indices = @transform_16, window_bounds = array<i64: 1, 2>}, {transform_indices = @transform_17, window_bounds = array<i64: 8, 2>}]} {
    %c0 = arith.constant 0 : index
    %c0_0 = arith.constant 0 : index
    %0 = vector.load %arg1[%c0, %c0_0] : memref<8x9xf32, #tpu.memory_space<vmem>>, vector<8x9xf32>
    %1 = arith.truncf %0 : vector<8x9xf32> to vector<8x9xbf16>
    %c0_1 = arith.constant 0 : index
    %c0_2 = arith.constant 0 : index
    %2 = vector.load %arg2[%c0_1, %c0_2] : memref<9x30xbf16, #tpu.memory_space<vmem>>, vector<9x30xbf16>
    %cst = arith.constant dense<0.000000e+00> : vector<8x30xf32>
    %3 = tpu.matmul %1, %2, %cst {dimension_numbers = #tpu.dot_dimension_numbers<[1], [0], [0], [1], [0, 0, 1, 1], [], []>} : vector<8x9xbf16>, vector<9x30xbf16>, vector<8x30xf32> -> vector<8x30xf32>
    %c0_3 = arith.constant 0 : index
    %c0_4 = arith.constant 0 : index
    %4 = vector.load %arg3[%c0_3, %c0_4] : memref<1x30xf32, #tpu.memory_space<vmem>>, vector<1x30xf32>
    %5 = vector.broadcast %4 : vector<1x30xf32> to vector<8x30xf32>
    %6 = arith.addf %3, %5 : vector<8x30xf32>
    %cst_5 = arith.constant 0.000000e+00 : f32
    %7 = vector.broadcast %cst_5 : f32 to vector<8x30xf32>
    %8 = arith.maximumf %6, %7 : vector<8x30xf32>
    %9 = arith.truncf %8 : vector<8x30xf32> to vector<8x30xbf16>
    %c0_6 = arith.constant 0 : index
    %c0_7 = arith.constant 0 : index
    %10 = vector.load %arg4[%c0_6, %c0_7] : memref<30x30xbf16, #tpu.memory_space<vmem>>, vector<30x30xbf16>
    %cst_8 = arith.constant dense<0.000000e+00> : vector<8x30xf32>
    %11 = tpu.matmul %9, %10, %cst_8 {dimension_numbers = #tpu.dot_dimension_numbers<[1], [0], [0], [1], [0, 0, 1, 1], [], []>} : vector<8x30xbf16>, vector<30x30xbf16>, vector<8x30xf32> -> vector<8x30xf32>
    %c0_9 = arith.constant 0 : index
    %c0_10 = arith.constant 0 : index
    %12 = vector.load %arg5[%c0_9, %c0_10] : memref<1x30xf32, #tpu.memory_space<vmem>>, vector<1x30xf32>
    %13 = vector.broadcast %12 : vector<1x30xf32> to vector<8x30xf32>
    %14 = arith.addf %11, %13 : vector<8x30xf32>
    %cst_11 = arith.constant 0.000000e+00 : f32
    %15 = vector.broadcast %cst_11 : f32 to vector<8x30xf32>
    %16 = arith.maximumf %14, %15 : vector<8x30xf32>
    %17 = arith.truncf %16 : vector<8x30xf32> to vector<8x30xbf16>
    %c0_12 = arith.constant 0 : index
    %c0_13 = arith.constant 0 : index
    %18 = vector.load %arg6[%c0_12, %c0_13] : memref<30x30xbf16, #tpu.memory_space<vmem>>, vector<30x30xbf16>
    %cst_14 = arith.constant dense<0.000000e+00> : vector<8x30xf32>
    %19 = tpu.matmul %17, %18, %cst_14 {dimension_numbers = #tpu.dot_dimension_numbers<[1], [0], [0], [1], [0, 0, 1, 1], [], []>} : vector<8x30xbf16>, vector<30x30xbf16>, vector<8x30xf32> -> vector<8x30xf32>
    %c0_15 = arith.constant 0 : index
    %c0_16 = arith.constant 0 : index
    %20 = vector.load %arg7[%c0_15, %c0_16] : memref<1x30xf32, #tpu.memory_space<vmem>>, vector<1x30xf32>
    %21 = vector.broadcast %20 : vector<1x30xf32> to vector<8x30xf32>
    %22 = arith.addf %19, %21 : vector<8x30xf32>
    %cst_17 = arith.constant 0.000000e+00 : f32
    %23 = vector.broadcast %cst_17 : f32 to vector<8x30xf32>
    %24 = arith.maximumf %22, %23 : vector<8x30xf32>
    %25 = arith.truncf %24 : vector<8x30xf32> to vector<8x30xbf16>
    %c0_18 = arith.constant 0 : index
    %c0_19 = arith.constant 0 : index
    %26 = vector.load %arg8[%c0_18, %c0_19] : memref<30x30xbf16, #tpu.memory_space<vmem>>, vector<30x30xbf16>
    %cst_20 = arith.constant dense<0.000000e+00> : vector<8x30xf32>
    %27 = tpu.matmul %25, %26, %cst_20 {dimension_numbers = #tpu.dot_dimension_numbers<[1], [0], [0], [1], [0, 0, 1, 1], [], []>} : vector<8x30xbf16>, vector<30x30xbf16>, vector<8x30xf32> -> vector<8x30xf32>
    %c0_21 = arith.constant 0 : index
    %c0_22 = arith.constant 0 : index
    %28 = vector.load %arg9[%c0_21, %c0_22] : memref<1x30xf32, #tpu.memory_space<vmem>>, vector<1x30xf32>
    %29 = vector.broadcast %28 : vector<1x30xf32> to vector<8x30xf32>
    %30 = arith.addf %27, %29 : vector<8x30xf32>
    %cst_23 = arith.constant 0.000000e+00 : f32
    %31 = vector.broadcast %cst_23 : f32 to vector<8x30xf32>
    %32 = arith.maximumf %30, %31 : vector<8x30xf32>
    %33 = arith.truncf %32 : vector<8x30xf32> to vector<8x30xbf16>
    %c0_24 = arith.constant 0 : index
    %c0_25 = arith.constant 0 : index
    %34 = vector.load %arg10[%c0_24, %c0_25] : memref<30x30xbf16, #tpu.memory_space<vmem>>, vector<30x30xbf16>
    %cst_26 = arith.constant dense<0.000000e+00> : vector<8x30xf32>
    %35 = tpu.matmul %33, %34, %cst_26 {dimension_numbers = #tpu.dot_dimension_numbers<[1], [0], [0], [1], [0, 0, 1, 1], [], []>} : vector<8x30xbf16>, vector<30x30xbf16>, vector<8x30xf32> -> vector<8x30xf32>
    %c0_27 = arith.constant 0 : index
    %c0_28 = arith.constant 0 : index
    %36 = vector.load %arg11[%c0_27, %c0_28] : memref<1x30xf32, #tpu.memory_space<vmem>>, vector<1x30xf32>
    %37 = vector.broadcast %36 : vector<1x30xf32> to vector<8x30xf32>
    %38 = arith.addf %35, %37 : vector<8x30xf32>
    %cst_29 = arith.constant 0.000000e+00 : f32
    %39 = vector.broadcast %cst_29 : f32 to vector<8x30xf32>
    %40 = arith.maximumf %38, %39 : vector<8x30xf32>
    %41 = arith.truncf %40 : vector<8x30xf32> to vector<8x30xbf16>
    %c0_30 = arith.constant 0 : index
    %c0_31 = arith.constant 0 : index
    %42 = vector.load %arg12[%c0_30, %c0_31] : memref<30x30xbf16, #tpu.memory_space<vmem>>, vector<30x30xbf16>
    %cst_32 = arith.constant dense<0.000000e+00> : vector<8x30xf32>
    %43 = tpu.matmul %41, %42, %cst_32 {dimension_numbers = #tpu.dot_dimension_numbers<[1], [0], [0], [1], [0, 0, 1, 1], [], []>} : vector<8x30xbf16>, vector<30x30xbf16>, vector<8x30xf32> -> vector<8x30xf32>
    %c0_33 = arith.constant 0 : index
    %c0_34 = arith.constant 0 : index
    %44 = vector.load %arg13[%c0_33, %c0_34] : memref<1x30xf32, #tpu.memory_space<vmem>>, vector<1x30xf32>
    %45 = vector.broadcast %44 : vector<1x30xf32> to vector<8x30xf32>
    %46 = arith.addf %43, %45 : vector<8x30xf32>
    %cst_35 = arith.constant 0.000000e+00 : f32
    %47 = vector.broadcast %cst_35 : f32 to vector<8x30xf32>
    %48 = arith.maximumf %46, %47 : vector<8x30xf32>
    %49 = arith.truncf %48 : vector<8x30xf32> to vector<8x30xbf16>
    %c0_36 = arith.constant 0 : index
    %c0_37 = arith.constant 0 : index
    %50 = vector.load %arg14[%c0_36, %c0_37] : memref<30x30xbf16, #tpu.memory_space<vmem>>, vector<30x30xbf16>
    %cst_38 = arith.constant dense<0.000000e+00> : vector<8x30xf32>
    %51 = tpu.matmul %49, %50, %cst_38 {dimension_numbers = #tpu.dot_dimension_numbers<[1], [0], [0], [1], [0, 0, 1, 1], [], []>} : vector<8x30xbf16>, vector<30x30xbf16>, vector<8x30xf32> -> vector<8x30xf32>
    %c0_39 = arith.constant 0 : index
    %c0_40 = arith.constant 0 : index
    %52 = vector.load %arg15[%c0_39, %c0_40] : memref<1x30xf32, #tpu.memory_space<vmem>>, vector<1x30xf32>
    %53 = vector.broadcast %52 : vector<1x30xf32> to vector<8x30xf32>
    %54 = arith.addf %51, %53 : vector<8x30xf32>
    %cst_41 = arith.constant 0.000000e+00 : f32
    %55 = vector.broadcast %cst_41 : f32 to vector<8x30xf32>
    %56 = arith.maximumf %54, %55 : vector<8x30xf32>
    %57 = arith.truncf %56 : vector<8x30xf32> to vector<8x30xbf16>
    %c0_42 = arith.constant 0 : index
    %c0_43 = arith.constant 0 : index
    %58 = vector.load %arg16[%c0_42, %c0_43] : memref<30x2xbf16, #tpu.memory_space<vmem>>, vector<30x2xbf16>
    %cst_44 = arith.constant dense<0.000000e+00> : vector<8x2xf32>
    %59 = tpu.matmul %57, %58, %cst_44 {dimension_numbers = #tpu.dot_dimension_numbers<[1], [0], [0], [1], [0, 0, 1, 1], [], []>} : vector<8x30xbf16>, vector<30x2xbf16>, vector<8x2xf32> -> vector<8x2xf32>
    %c0_45 = arith.constant 0 : index
    %c0_46 = arith.constant 0 : index
    %60 = vector.load %arg17[%c0_45, %c0_46] : memref<1x2xf32, #tpu.memory_space<vmem>>, vector<1x2xf32>
    %61 = vector.broadcast %60 : vector<1x2xf32> to vector<8x2xf32>
    %62 = arith.addf %59, %61 : vector<8x2xf32>
    %63 = vector.extract_strided_slice %62 {offsets = [0, 1], sizes = [8, 1], strides = [1, 1]} : vector<8x2xf32> to vector<8x1xf32>
    %64 = vector.extract_strided_slice %62 {offsets = [0, 0], sizes = [8, 1], strides = [1, 1]} : vector<8x2xf32> to vector<8x1xf32>
    %65 = arith.subf %63, %64 : vector<8x1xf32>
    %66 = math.absf %65 : vector<8x1xf32>
    %cst_47 = arith.constant 0.000000e+00 : f32
    %67 = vector.broadcast %cst_47 : f32 to vector<8x1xf32>
    %68 = arith.subf %67, %66 : vector<8x1xf32>
    %69 = math.exp %68 : vector<8x1xf32>
    %cst_48 = arith.constant 1.000000e+00 : f32
    %70 = vector.broadcast %cst_48 : f32 to vector<8x1xf32>
    %71 = arith.addf %70, %69 : vector<8x1xf32>
    %72 = tpu.reciprocal %71 {approx = true} : vector<8x1xf32> -> vector<8x1xf32>
    %cst_49 = arith.constant 0.000000e+00 : f32
    %73 = vector.broadcast %cst_49 : f32 to vector<8x1xf32>
    %74 = arith.cmpf oge, %65, %73 : vector<8x1xf32>
    %cst_50 = arith.constant 1.000000e+00 : f32
    %75 = vector.broadcast %cst_50 : f32 to vector<8x1xf32>
    %76 = arith.subf %75, %72 : vector<8x1xf32>
    %77 = arith.select %74, %72, %76 : vector<8x1xi1>, vector<8x1xf32>
    %cst_51 = arith.constant 1.000000e+00 : f32
    %78 = vector.broadcast %cst_51 : f32 to vector<8x1xf32>
    %79 = arith.subf %78, %77 : vector<8x1xf32>
    %c0_52 = arith.constant 0 : index
    %c0_53 = arith.constant 0 : index
    %80 = vector.load %arg18[%c0_52, %c0_53] : memref<8x2xf32, #tpu.memory_space<vmem>>, vector<8x1xf32>
    tpu.vector_store %arg18[%c0_52, %c0_53], %79 {strides = array<i32>} : memref<8x2xf32, #tpu.memory_space<vmem>>, vector<8x1xf32>,
    %c0_54 = arith.constant 0 : index
    %c1 = arith.constant 1 : index
    %81 = vector.load %arg18[%c0_54, %c1] : memref<8x2xf32, #tpu.memory_space<vmem>>, vector<8x1xf32>
    tpu.vector_store %arg18[%c0_54, %c1], %77 {strides = array<i32>} : memref<8x2xf32, #tpu.memory_space<vmem>>, vector<8x1xf32>,
    return
  }
  func.func @transform_0(%arg0: i32) -> (i32, i32) {
    %c0_i32 = arith.constant 0 : i32
    %c0_i32_0 = arith.constant 0 : i32
    return %arg0, %c0_i32 : i32, i32
  }
  func.func @transform_1(%arg0: i32) -> (i32, i32) {
    %c0_i32 = arith.constant 0 : i32
    %c0_i32_0 = arith.constant 0 : i32
    %c0_i32_1 = arith.constant 0 : i32
    return %c0_i32, %c0_i32_0 : i32, i32
  }
  func.func @transform_2(%arg0: i32) -> (i32, i32) {
    %c0_i32 = arith.constant 0 : i32
    %c0_i32_0 = arith.constant 0 : i32
    %c0_i32_1 = arith.constant 0 : i32
    return %c0_i32, %c0_i32_0 : i32, i32
  }
  func.func @transform_3(%arg0: i32) -> (i32, i32) {
    %c0_i32 = arith.constant 0 : i32
    %c0_i32_0 = arith.constant 0 : i32
    %c0_i32_1 = arith.constant 0 : i32
    return %c0_i32, %c0_i32_0 : i32, i32
  }
  func.func @transform_4(%arg0: i32) -> (i32, i32) {
    %c0_i32 = arith.constant 0 : i32
    %c0_i32_0 = arith.constant 0 : i32
    %c0_i32_1 = arith.constant 0 : i32
    return %c0_i32, %c0_i32_0 : i32, i32
  }
  func.func @transform_5(%arg0: i32) -> (i32, i32) {
    %c0_i32 = arith.constant 0 : i32
    %c0_i32_0 = arith.constant 0 : i32
    %c0_i32_1 = arith.constant 0 : i32
    return %c0_i32, %c0_i32_0 : i32, i32
  }
  func.func @transform_6(%arg0: i32) -> (i32, i32) {
    %c0_i32 = arith.constant 0 : i32
    %c0_i32_0 = arith.constant 0 : i32
    %c0_i32_1 = arith.constant 0 : i32
    return %c0_i32, %c0_i32_0 : i32, i32
  }
  func.func @transform_7(%arg0: i32) -> (i32, i32) {
    %c0_i32 = arith.constant 0 : i32
    %c0_i32_0 = arith.constant 0 : i32
    %c0_i32_1 = arith.constant 0 : i32
    return %c0_i32, %c0_i32_0 : i32, i32
  }
  func.func @transform_8(%arg0: i32) -> (i32, i32) {
    %c0_i32 = arith.constant 0 : i32
    %c0_i32_0 = arith.constant 0 : i32
    %c0_i32_1 = arith.constant 0 : i32
    return %c0_i32, %c0_i32_0 : i32, i32
  }
  func.func @transform_9(%arg0: i32) -> (i32, i32) {
    %c0_i32 = arith.constant 0 : i32
    %c0_i32_0 = arith.constant 0 : i32
    %c0_i32_1 = arith.constant 0 : i32
    return %c0_i32, %c0_i32_0 : i32, i32
  }
  func.func @transform_10(%arg0: i32) -> (i32, i32) {
    %c0_i32 = arith.constant 0 : i32
    %c0_i32_0 = arith.constant 0 : i32
    %c0_i32_1 = arith.constant 0 : i32
    return %c0_i32, %c0_i32_0 : i32, i32
  }
  func.func @transform_11(%arg0: i32) -> (i32, i32) {
    %c0_i32 = arith.constant 0 : i32
    %c0_i32_0 = arith.constant 0 : i32
    %c0_i32_1 = arith.constant 0 : i32
    return %c0_i32, %c0_i32_0 : i32, i32
  }
  func.func @transform_12(%arg0: i32) -> (i32, i32) {
    %c0_i32 = arith.constant 0 : i32
    %c0_i32_0 = arith.constant 0 : i32
    %c0_i32_1 = arith.constant 0 : i32
    return %c0_i32, %c0_i32_0 : i32, i32
  }
  func.func @transform_13(%arg0: i32) -> (i32, i32) {
    %c0_i32 = arith.constant 0 : i32
    %c0_i32_0 = arith.constant 0 : i32
    %c0_i32_1 = arith.constant 0 : i32
    return %c0_i32, %c0_i32_0 : i32, i32
  }
  func.func @transform_14(%arg0: i32) -> (i32, i32) {
    %c0_i32 = arith.constant 0 : i32
    %c0_i32_0 = arith.constant 0 : i32
    %c0_i32_1 = arith.constant 0 : i32
    return %c0_i32, %c0_i32_0 : i32, i32
  }
  func.func @transform_15(%arg0: i32) -> (i32, i32) {
    %c0_i32 = arith.constant 0 : i32
    %c0_i32_0 = arith.constant 0 : i32
    %c0_i32_1 = arith.constant 0 : i32
    return %c0_i32, %c0_i32_0 : i32, i32
  }
  func.func @transform_16(%arg0: i32) -> (i32, i32) {
    %c0_i32 = arith.constant 0 : i32
    %c0_i32_0 = arith.constant 0 : i32
    %c0_i32_1 = arith.constant 0 : i32
    return %c0_i32, %c0_i32_0 : i32, i32
  }
  func.func @transform_17(%arg0: i32) -> (i32, i32) {
    %c0_i32 = arith.constant 0 : i32
    %c0_i32_0 = arith.constant 0 : i32
    return %arg0, %c0_i32 : i32, i32
  }
}

</mosaic_0001>

<bundles_post_ra>
// kernel: tpu_custom_call.1
= control target key start
LH: loop header
LB: loop body
LE: loop exit
PB: predicated region body
PF: predicated region fallthrough
CT: control target
= control target key end

     0   :  { %s1335_s0 = inlined_call_operand.hbm [shape: f32[8,9], index: 0, kind: input, shape index: {}]   ;;  %s1336_s1 = inlined_call_operand.hbm [shape: bf16[9,30], index: 1, kind: input, shape index: {}]   ;;  %s1337_s2 = inlined_call_operand.vmem [shape: f32[1,30], index: 2, kind: input, shape index: {}]   ;;  %s1338_s3 = inlined_call_operand.vmem [shape: bf16[30,30], index: 3, kind: input, shape index: {}]   ;;  %s1339_s4 = inlined_call_operand.hbm [shape: f32[1,30], index: 4, kind: input, shape index: {}]   ;;  %s1340_s5 = inlined_call_operand.hbm [shape: bf16[30,30], index: 5, kind: input, shape index: {}]   ;;  %s1341_s6 = inlined_call_operand.hbm [shape: f32[1,30], index: 6, kind: input, shape index: {}]   ;;  %s1342_s7 = inlined_call_operand.hbm [shape: bf16[30,30], index: 7, kind: input, shape index: {}]   ;;  %s1343_s8 = inlined_call_operand.hbm [shape: f32[1,30], index: 8, kind: input, shape index: {}]   ;;  %s1344_s9 = inlined_call_operand.vmem [shape: bf16[30,30], index: 9, kind: input, shape index: {}]   ;;  %s1345_s10 = inlined_call_operand.vmem [shape: f32[1,30], index: 10, kind: input, shape index: {}]   ;;  %s1346_s11 = inlined_call_operand.hbm [shape: bf16[30,30], index: 11, kind: input, shape index: {}]   ;;  %s1347_s12 = inlined_call_operand.vmem [shape: f32[1,30], index: 12, kind: input, shape index: {}]   ;;  %s1348_s13 = inlined_call_operand.hbm [shape: bf16[30,30], index: 13, kind: input, shape index: {}]   ;;  %s1349_s14 = inlined_call_operand.vmem [shape: f32[1,30], index: 14, kind: input, shape index: {}]   ;;  %s1350_s15 = inlined_call_operand.vmem [shape: bf16[30,2], index: 15, kind: input, shape index: {}]   ;;  %s1351_s16 = inlined_call_operand.vmem [shape: f32[1,2], index: 16, kind: input, shape index: {}]   ;;  %s1352_s17 = inlined_call_operand.vmem [shape: f32[8,2], index: 17, kind: output, shape index: {}]  }
   0x1   :  { %1353 = sst [smem:[#allocation21_spill]] %s1335_s0 }
   0x2   :  { %1354 = sst [smem:[#allocation22_spill]] %s1336_s1 }
   0x3   :  { %22 = vsyncpa [#allocation3], 0 }
   0x4   :  { %23 = vsyncpa [#allocation5], 0 }
   0x5   :  { %24 = vsyncpa [#allocation8], 0 }
   0x6   :  { %25 = vsyncpa [#allocation11], 0 }
   0x7   :  { %26 = vsyncpa [#allocation14], 0  ;;  %s1103_s24 = smov [#allocation4]  }
   0x8   :  { %s42_s25 = sshll.u32 %s1103_s24, 4  ;;  %s43_s25 = int_to_ptr.vmem [resolvable:$true] %s42_s25 }
   0x9   :  { %s921_s26 = scalar_lea.vmem %s43_s25, 128  ;;  %p926_p1 = scmp.lt.s32.totalorder %s43_s25, %s43_s25 }
   0xa   :  { %p922_p0 = scmp.ne.s32.totalorder %s43_s25, %s921_s26  ;;  %p927_p2 = scmp.lt.s32.totalorder %s921_s26, %s921_s26 }
   0xc   :  { %p928_p3 = por %p927_p2, %p926_p1 }
   0xe   :  { %p929_p4 = pnand %p928_p3, %p922_p0 }
  0x10   :  { %932 = shalt.err (!%p929_p4)
}
  0x11   :  { %s1104_s27 = smov 64   ;;  %s1105_s28 = smov 4  }
  0x12   :  { %s1355_s30 = sld [smem:[#allocation22_spill]]  ;;  %s1106_s18 = smov [#allocation7]  }
  0x13   :  { %s68_s19 = sshll.u32 %s1106_s18, 4  ;;  %s1107_s1 = smov [#allocation10]   ;;  %s69_s19 = int_to_ptr.vmem [resolvable:$true] %s68_s19 }
  0x14   :  { %s90_s20 = sshll.u32 %s1107_s1, 4  ;;  %s941_s21 = scalar_lea.vmem %s69_s19, 256  ;;  %s91_s20 = int_to_ptr.vmem [resolvable:$true] %s90_s20 }
  0x15   :  { %p942_p5 = scmp.ne.s32.totalorder %s69_s19, %s941_s21  ;;  %p946_p6 = scmp.lt.s32.totalorder %s69_s19, %s69_s19 }
  0x16   :  { %p947_p7 = scmp.lt.s32.totalorder %s941_s21, %s941_s21 }
  0x18   :  { %48 = dma.hbm_to_vmem [thread:$0]  %s1355_s30, 128, %s43_s25, [#allocation5], %s1104_s27, %s1104_s27, %s1105_s28  }
  0x19   :  { %p948_p8 = por %p947_p7, %p946_p6 }
  0x1b   :  { %p949_p9 = pnand %p948_p8, %p942_p5 }
  0x1d   :  { %952 = shalt.err (!%p949_p9)
}
  0x1e   :  { %74 = dma.hbm_to_vmem [thread:$0]  %s1340_s5, 256, %s69_s19, [#allocation8], %s1104_s27, %s1104_s27, %s1105_s28  }
  0x1f   :  { %s961_s24 = scalar_lea.vmem %s91_s20, 256  ;;  %p966_p11 = scmp.lt.s32.totalorder %s91_s20, %s91_s20 }
  0x20   :  { %p962_p10 = scmp.ne.s32.totalorder %s91_s20, %s961_s24  ;;  %p967_p12 = scmp.lt.s32.totalorder %s961_s24, %s961_s24 }
  0x22   :  { %p968_p13 = por %p967_p12, %p966_p11 }
  0x24   :  { %p969_p0 = pnand %p968_p13, %p962_p10 }
  0x26   :  { %972 = shalt.err (!%p969_p0)
}
  0x27   :  { %96 = dma.hbm_to_vmem [thread:$0]  %s1342_s7, 256, %s91_s20, [#allocation11], %s1104_s27, %s1104_s27, %s1105_s28  }
  0x28   :  { %s1108_s29 = smov [#allocation13]   ;;  %s1109_s30 = smov [#allocation2]  }
  0x29   :  { %s116_s0 = sshll.u32 %s1108_s29, 4  ;;  %s33_s5 = sshll.u32 %s1109_s30, 4  ;;  %s117_s0 = int_to_ptr.vmem [resolvable:$true] %s116_s0  ;;  %s34_s5 = int_to_ptr.vmem [resolvable:$true] %s33_s5 }
  0x2a   :  { %s981_s18 = scalar_lea.vmem %s117_s0, 256  ;;  %p986_p2 = scmp.lt.s32.totalorder %s117_s0, %s117_s0 }
  0x2b   :  { %p982_p1 = scmp.ne.s32.totalorder %s117_s0, %s981_s18  ;;  %p987_p3 = scmp.lt.s32.totalorder %s981_s18, %s981_s18 }
  0x2d   :  { %p988_p4 = por %p987_p3, %p986_p2 }
  0x2f   :  { %p989_p5 = pnand %p988_p4, %p982_p1 }
  0x31   :  { %992 = shalt.err (!%p989_p5)
}
  0x32   :  { %122 = dma.hbm_to_vmem [thread:$0]  %s1346_s11, 256, %s117_s0, [#allocation14], %s1104_s27, %s1104_s27, %s1105_s28  }
  0x33   :  { %s1001_s7 = scalar_lea.vmem %s34_s5, 128  ;;  %p1006_p7 = scmp.lt.s32.totalorder %s34_s5, %s34_s5 }
  0x34   :  { %p1002_p6 = scmp.ne.s32.totalorder %s34_s5, %s1001_s7  ;;  %p1007_p8 = scmp.lt.s32.totalorder %s1001_s7, %s1001_s7 }
  0x36   :  { %p1008_p9 = por %p1007_p8, %p1006_p7 }
  0x38   :  { %p1009_p10 = pnand %p1008_p9, %p1002_p6 }
  0x3a   :  { %1012 = shalt.err (!%p1009_p10)
}
  0x3b   :  { %s1356_s22 = sld [smem:[#allocation21_spill]]  ;;  %s1110_s23 = smov [#allocation6]  }
  0x3c   :  { %s59_s24 = sshll.u32 %s1110_s23, 4  ;;  %s1111_s25 = smov [#allocation9]   ;;  %s60_s24 = int_to_ptr.vmem [resolvable:$true] %s59_s24 }
  0x3d   :  { %s81_s26 = sshll.u32 %s1111_s25, 4  ;;  %s1021_s29 = scalar_lea.vmem %s60_s24, 16  ;;  %s82_s26 = int_to_ptr.vmem [resolvable:$true] %s81_s26 }
  0x3e   :  { %p1022_p11 = scmp.ne.s32.totalorder %s60_s24, %s1021_s29  ;;  %s1025_s11 = scalar_lea.vmem %s60_s24, 32 }
  0x3f   :  { %p1026_p12 = scmp.lt.s32.totalorder %s60_s24, %s60_s24  ;;  %p1027_p13 = scmp.lt.s32.totalorder %s1025_s11, %s1021_s29 }
  0x41   :  { %36 = dma.hbm_to_vmem [thread:$0]  %s1356_s22, 128, %s34_s5, [#allocation3]  }
  0x42   :  { %p1028_p0 = por %p1027_p13, %p1026_p12 }
  0x44   :  { %p1029_p1 = pnand %p1028_p0, %p1022_p11 }
  0x46   :  { %1032 = shalt.err (!%p1029_p1)
}
  0x47   :  { %62 = dma.hbm_to_vmem [thread:$0]  %s1339_s4, 16, %s60_s24, [#allocation5]  }
  0x48   :  { %s1041_s18 = scalar_lea.vmem %s82_s26, 16  ;;  %s1045_s5 = scalar_lea.vmem %s82_s26, 32 }
  0x49   :  { %p1042_p2 = scmp.ne.s32.totalorder %s82_s26, %s1041_s18  ;;  %p1046_p3 = scmp.lt.s32.totalorder %s82_s26, %s82_s26 }
  0x4a   :  { %p1047_p4 = scmp.lt.s32.totalorder %s1045_s5, %s1041_s18 }
  0x4c   :  { %p1048_p5 = por %p1047_p4, %p1046_p3 }
  0x4e   :  { %p1049_p6 = pnand %p1048_p5, %p1042_p2 }
  0x50   :  { %1052 = shalt.err (!%p1049_p6)
}
  0x51   :  { %84 = dma.hbm_to_vmem [thread:$0]  %s1341_s6, 16, %s82_s26, [#allocation8]  }
  0x52   :  { %s1112_s7 = smov [#allocation12]   ;;  %s1113_s21 = smov [#allocation15]  }
  0x53   :  { %s103_s20 = sshll.u32 %s1112_s7, 4  ;;  %s130_s22 = sshll.u32 %s1113_s21, 4  ;;  %s104_s20 = int_to_ptr.vmem [resolvable:$true] %s103_s20  ;;  %s131_s22 = int_to_ptr.vmem [resolvable:$true] %s130_s22 }
  0x54   :  { %s1061_s23 = scalar_lea.vmem %s104_s20, 16  ;;  %s1065_s4 = scalar_lea.vmem %s104_s20, 32 }
  0x55   :  { %p1062_p7 = scmp.ne.s32.totalorder %s104_s20, %s1061_s23  ;;  %p1066_p8 = scmp.lt.s32.totalorder %s104_s20, %s104_s20 }
  0x56   :  { %p1067_p9 = scmp.lt.s32.totalorder %s1065_s4, %s1061_s23 }
  0x58   :  { %p1068_p10 = por %p1067_p9, %p1066_p8 }
  0x5a   :  { %p1069_p11 = pnand %p1068_p10, %p1062_p7 }
  0x5c   :  { %1072 = shalt.err (!%p1069_p11)
}
  0x5d   :  { %106 = dma.hbm_to_vmem [thread:$0]  %s1343_s8, 16, %s104_s20, [#allocation11]  }
  0x5e   :  { %s1081_s29 = scalar_lea.vmem %s131_s22, 256  ;;  %p1086_p13 = scmp.lt.s32.totalorder %s131_s22, %s131_s22 }
  0x5f   :  { %p1082_p12 = scmp.ne.s32.totalorder %s131_s22, %s1081_s29  ;;  %p1087_p0 = scmp.lt.s32.totalorder %s1081_s29, %s1081_s29 }
  0x61   :  { %p1088_p1 = por %p1087_p0, %p1086_p13 }
  0x63   :  { %p1089_p2 = pnand %p1088_p1, %p1082_p12 }
  0x65   :  { %1092 = shalt.err (!%p1089_p2)
}
  0x66   :  { %136 = dma.hbm_to_vmem [thread:$0]  %s1348_s13, 256, %s131_s22, [#allocation14], %s1104_s27, %s1104_s27, %s1105_s28  }
  0x67   :  { %1093 = dma.done.wait [#allocation3], 128  }
  0x68   :  { %1094 = vsyncadd [#allocation3], 4294967168 }
  0x69   :  { %1095 = dma.done.wait [#allocation5], 144  }
  0x6a   :  { %1096 = vsyncadd [#allocation5], 4294967152 }
  0x6b   :  { %1097 = dma.done.wait [#allocation8], 272  }
  0x6c   :  { %1098 = vsyncadd [#allocation8], 4294967024 }
  0x6d   :  { %1099 = dma.done.wait [#allocation11], 272  }
  0x6e   :  { %1100 = vsyncadd [#allocation11], 4294967024 }
  0x6f   :  { %1101 = dma.done.wait [#allocation14], 512  }
  0x70   :  { %1102 = vsyncadd [#allocation14], 4294966784  ;;  %vm191_vm0 = vcmask 1043456   ;;  %v1114_v0 = vmov 0.0   ;;  %vm1115_vm1 = vmmov 0   ;;  %vm192_vm2 = vcmask 1044480  }
  0x71   :  { %816 = vmatprep.subr.bf16.mxu0 %v1114_v0  ;;  %822 = vmatprep.subr.bf16.mxu1 %v1114_v0  ;;  %v1116_v1 = vmov 65535   ;;  %v894_v4 = vld [vmem:[#allocation4] sm:$0x1f]   ;;  %v171_v5 = vld [vmem:[#allocation2] sm:$0xff]  ;;  %vm187_vm3 = vcmask 72704   ;;  %vm266_vm4 = vcmask 1046528  }
  0x72   :  { %818 = vmatprep.mubr.msk.bf16.mxu0 %vm1115_vm1, %v1114_v0  ;;  %826 = vmatprep.mubr.msk.bf16.mxu1 %vm1115_vm1, %v1114_v0  ;;  %v193_v2 = vsel %vm191_vm0, 4294967295, %v1116_v1  ;;  %v172_v7 = vpack.c.bf16 %v171_v5, %v171_v5  ;;  %v895_v8 = vld [vmem:[%s1338_s3 + $0x8] sm:$0x7f]   ;;  %v896_v10 = vld [vmem:[%s1338_s3] sm:$0xff]   ;;  %vm262_vm5 = vcmask 244736   ;;  %v898_v21 = vld [vmem:[#allocation7] sm:$0xff]  }
  0x73   :  { %v194_v3 = vsel %vm192_vm2, %v193_v2, 0  ;;  %v268_v9 = vsel %vm266_vm4, %v895_v8, 0  ;;  %v897_v11 = vld [vmem:[#allocation7 + $0x8] sm:$0x7f]   ;;  %v899_v22 = vld [vmem:[#allocation10 + $0x8] sm:$0x7f]  }
  0x74   :  { %v196_v6 = vand.u32 %v894_v4, %v194_v3  ;;  %823 = vmatpush3.bf16.msra.mxu1 %v268_v9  ;;  %v338_v12 = vsel %vm266_vm4, %v897_v11, 0  ;;  %v762_v13 = vld [vmem:[%s1337_s2] ss:$0 sm:$0xff]  ;;  %v408_v23 = vsel %vm266_vm4, %v899_v22, 0  ;;  %v765_v24 = vld [vmem:[#allocation6] ss:$0 sm:$0xff] }
  0x75   :  { %824 = vmatprep.subr.bf16.mxu1 %v1114_v0  ;;  %v900_v32 = vld [vmem:[#allocation10] sm:$0xff]   ;;  %v769_v35 = vld [vmem:[#allocation9] ss:$0 sm:$0xff]  ;;  %v773_v46 = vld [vmem:[#allocation12] ss:$0 sm:$0xff]  ;;  %vm749_vm7 = vcmask 7168  }
  0x76   :  { %817 = vmatpush3.bf16.msra.mxu0 %v196_v6  ;;  %v901_v33 = vld [vmem:[%s1344_s9 + $0x8] sm:$0x7f]   ;;  %v902_v43 = vld [vmem:[%s1344_s9] sm:$0xff]   ;;  %v904_v54 = vld [vmem:[#allocation13] sm:$0xff]   ;;  %vm751_vm8 = vcmask 15368  }
  0x77   :  { %830 = vmatprep.subr.bf16.mxu0 %v1114_v0  ;;  %v478_v34 = vsel %vm266_vm4, %v901_v33, 0  ;;  %v903_v44 = vld [vmem:[#allocation13 + $0x8] sm:$0x7f]   ;;  %v905_v55 = vld [vmem:[#allocation15 + $0x8] sm:$0x7f]   ;;  %v906_v2 = vld [vmem:[#allocation15] sm:$0xff]  }
  0x78   :  { %825 = vmatpush3.bf16.msra.mxu1 %v896_v10  ;;  %v548_v45 = vsel %vm266_vm4, %v903_v44, 0  ;;  %v618_v56 = vsel %vm266_vm4, %v905_v55, 0  ;;  %v777_v57 = vld [vmem:[%s1345_s10] ss:$0 sm:$0xff]  ;;  %v907_v3 = vld [vmem:[%s1350_s15 + $0x8] sm:$0x7f]  }
  0x79   :  { %819 = vmatmul.mubr.msk.bf16.vlgmr.msra.gmra.mxu0 %vm187_vm3, %v172_v7  ;;  %838 = vmatprep.subr.bf16.mxu1 %v1114_v0  ;;  %v688_v4 = vsel %vm266_vm4, %v907_v3, 0  ;;  %v781_v5 = vld [vmem:[%s1347_s12] ss:$0 sm:$0xff] }
  0x7a   :  { %834 = vmatprep.mubr.msk.bf16.mxu0 %vm1115_vm1, %v1114_v0  ;;  %831 = vmatpush3.bf16.msra.mxu0 %v338_v12 }
  0x7b   :  { %832 = vmatprep.subr.bf16.mxu0 %v1114_v0 }
  0x7e   :  { %833 = vmatpush3.bf16.msra.mxu0 %v898_v21  ;;  %v789_v21 = vld [vmem:[%s1351_s16] ss:$0 sm:$0xff] }
  0x7f   :  { %846 = vmatprep.subr.bf16.mxu0 %v1114_v0 }
 0x139   :  { %v232_v14 = vpop.f32.mrf.mxu0 }
 0x13a   :  { %v233_v15 = vadd.f32 %v762_v13, %v232_v14  ;;  %v908_v13 = vld [vmem:[%s1350_s15] sm:$0xff]   ;;  %s1117_s15 = smov 1  }
 0x13b   :  { %v820_v16 = vpop.f32.mrf.mxu0 }
 0x13c   :  { %v238_v17 = vmax.f32 %v233_v15, 0.0 }
 0x13d   :  { %v235_v18 = vpop.f32.mrf.mxu0 }
 0x13e   :  { %v239_v19 = vpack.c.bf16 %v238_v17, %v238_v17 }
 0x13f   :  { %v821_v20 = vpop.f32.mrf.mxu0 }
 0x140   :  { %827 = vmatmul.mubr.msk.bf16.vlgmr.msra.gmra.mxu1 %vm262_vm5, %v239_v19 }
 0x141   :  { %842 = vmatprep.mubr.msk.bf16.mxu1 %vm1115_vm1, %v1114_v0  ;;  %839 = vmatpush3.bf16.msra.mxu1 %v408_v23 }
 0x142   :  { %840 = vmatprep.subr.bf16.mxu1 %v1114_v0 }
 0x145   :  { %841 = vmatpush3.bf16.msra.mxu1 %v900_v32 }
 0x146   :  { %854 = vmatprep.subr.bf16.mxu1 %v1114_v0 }
 0x200   :  { %v304_v25 = vpop.f32.mrf.mxu1 }
 0x201   :  { %v305_v26 = vadd.f32 %v765_v24, %v304_v25 }
 0x202   :  { %v828_v27 = vpop.f32.mrf.mxu1 }
 0x203   :  { %v310_v28 = vmax.f32 %v305_v26, 0.0 }
 0x204   :  { %v307_v29 = vpop.f32.mrf.mxu1 }
 0x205   :  { %v311_v30 = vpack.c.bf16 %v310_v28, %v310_v28 }
 0x206   :  { %v829_v31 = vpop.f32.mrf.mxu1 }
 0x207   :  { %835 = vmatmul.mubr.msk.bf16.vlgmr.msra.gmra.mxu0 %vm262_vm5, %v311_v30 }
 0x208   :  { %850 = vmatprep.mubr.msk.bf16.mxu0 %vm1115_vm1, %v1114_v0  ;;  %847 = vmatpush3.bf16.msra.mxu0 %v478_v34 }
 0x209   :  { %848 = vmatprep.subr.bf16.mxu0 %v1114_v0 }
 0x20c   :  { %849 = vmatpush3.bf16.msra.mxu0 %v902_v43 }
 0x20d   :  { %862 = vmatprep.subr.bf16.mxu0 %v1114_v0 }
 0x2c7   :  { %v374_v36 = vpop.f32.mrf.mxu0 }
 0x2c8   :  { %v375_v37 = vadd.f32 %v769_v35, %v374_v36 }
 0x2c9   :  { %v836_v38 = vpop.f32.mrf.mxu0 }
 0x2ca   :  { %v380_v39 = vmax.f32 %v375_v37, 0.0 }
 0x2cb   :  { %v377_v40 = vpop.f32.mrf.mxu0 }
 0x2cc   :  { %v381_v41 = vpack.c.bf16 %v380_v39, %v380_v39 }
 0x2cd   :  { %v837_v42 = vpop.f32.mrf.mxu0 }
 0x2ce   :  { %843 = vmatmul.mubr.msk.bf16.vlgmr.msra.gmra.mxu1 %vm262_vm5, %v381_v41 }
 0x2cf   :  { %858 = vmatprep.mubr.msk.bf16.mxu1 %vm1115_vm1, %v1114_v0  ;;  %855 = vmatpush3.bf16.msra.mxu1 %v548_v45 }
 0x2d0   :  { %856 = vmatprep.subr.bf16.mxu1 %v1114_v0 }
 0x2d3   :  { %857 = vmatpush3.bf16.msra.mxu1 %v904_v54 }
 0x2d4   :  { %870 = vmatprep.subr.bf16.mxu1 %v1114_v0 }
 0x38e   :  { %v444_v47 = vpop.f32.mrf.mxu1 }
 0x38f   :  { %v445_v48 = vadd.f32 %v773_v46, %v444_v47 }
 0x390   :  { %v844_v49 = vpop.f32.mrf.mxu1 }
 0x391   :  { %v450_v50 = vmax.f32 %v445_v48, 0.0 }
 0x392   :  { %v447_v51 = vpop.f32.mrf.mxu1 }
 0x393   :  { %v451_v52 = vpack.c.bf16 %v450_v50, %v450_v50 }
 0x394   :  { %v845_v53 = vpop.f32.mrf.mxu1 }
 0x395   :  { %851 = vmatmul.mubr.msk.bf16.vlgmr.msra.gmra.mxu0 %vm262_vm5, %v451_v52 }
 0x396   :  { %866 = vmatprep.mubr.msk.bf16.mxu0 %vm1115_vm1, %v1114_v0  ;;  %863 = vmatpush3.bf16.msra.mxu0 %v618_v56 }
 0x397   :  { %864 = vmatprep.subr.bf16.mxu0 %v1114_v0 }
 0x39a   :  { %865 = vmatpush3.bf16.msra.mxu0 %v906_v2 }
 0x455   :  { %v514_v58 = vpop.f32.mrf.mxu0 }
 0x456   :  { %v515_v59 = vadd.f32 %v777_v57, %v514_v58 }
 0x457   :  { %v852_v60 = vpop.f32.mrf.mxu0 }
 0x458   :  { %v520_v61 = vmax.f32 %v515_v59, 0.0 }
 0x459   :  { %v517_v62 = vpop.f32.mrf.mxu0 }
 0x45a   :  { %v521_v63 = vpack.c.bf16 %v520_v61, %v520_v61 }
 0x45b   :  { %v853_v1 = vpop.f32.mrf.mxu0 }
 0x45c   :  { %859 = vmatmul.mubr.msk.bf16.vlgmr.msra.gmra.mxu1 %vm262_vm5, %v521_v63 }
 0x45d   :  { %874 = vmatprep.mubr.msk.bf16.mxu1 %vm1115_vm1, %v1114_v0  ;;  %871 = vmatpush3.bf16.msra.mxu1 %v688_v4 }
 0x45e   :  { %872 = vmatprep.subr.bf16.mxu1 %v1114_v0  ;;  %v785_v0 = vld [vmem:[%s1349_s14] ss:$0 sm:$0xff]  ;;  %s1118_s14 = smov 127  }
 0x461   :  { %873 = vmatpush3.bf16.msra.mxu1 %v908_v13 }
 0x51c   :  { %v584_v6 = vpop.f32.mrf.mxu1 }
 0x51d   :  { %v585_v7 = vadd.f32 %v781_v5, %v584_v6 }
 0x51e   :  { %v860_v8 = vpop.f32.mrf.mxu1 }
 0x51f   :  { %v590_v9 = vmax.f32 %v585_v7, 0.0 }
 0x520   :  { %v587_v10 = vpop.f32.mrf.mxu1 }
 0x521   :  { %v591_v11 = vpack.c.bf16 %v590_v9, %v590_v9 }
 0x522   :  { %v861_v12 = vpop.f32.mrf.mxu1 }
 0x523   :  { %867 = vmatmul.mubr.msk.bf16.vlgmr.msra.gmra.mxu0 %vm262_vm5, %v591_v11 }
 0x5e3   :  { %v654_v14 = vpop.f32.mrf.mxu0 }
 0x5e4   :  { %v655_v15 = vadd.f32 %v785_v0, %v654_v14 }
 0x5e5   :  { %v868_v16 = vpop.f32.mrf.mxu0 }
 0x5e6   :  { %v660_v17 = vmax.f32 %v655_v15, 0.0 }
 0x5e7   :  { %v657_v18 = vpop.f32.mrf.mxu0 }
 0x5e8   :  { %v661_v19 = vpack.c.bf16 %v660_v17, %v660_v17 }
 0x5e9   :  { %v869_v20 = vpop.f32.mrf.mxu0 }
 0x5ea   :  { %875 = vmatmul.mubr.msk.bf16.vlgmr.msra.gmra.mxu1 %vm262_vm5, %v661_v19 }
 0x6aa   :  { %v724_v22 = vpop.f32.mrf.mxu1 }
 0x6ab   :  { %v725_v23 = vadd.f32 %v789_v21, %v724_v22 }
 0x6ac   :  { %v876_v24 = vpop.f32.mrf.mxu1 }
 0x6ad   :  { %731 = vrot.lane.b32.xlu0 %v725_v23, %s1117_s15 }
 0x6ae   :  { %v727_v25 = vpop.f32.mrf.mxu1 }
 0x6b0   :  { %v877_v26 = vpop.f32.mrf.mxu1 }
 0x71f   :  { %v732_v27 = vpop.permute.xlu0 %731 }
 0x720   :  { %v734_v28 = vsub.f32 %v725_v23, %v732_v27 }
 0x722   :  { %v735_v29 = vand.u32 2147483647, %v734_v28  ;;  %vm741_vm6 = vcmp.ge.f32.partialorder %v734_v28, 0.0 }
 0x724   :  { %v736_v30 = vsub.f32 0.0, %v735_v29 }
 0x726   :  { %v737_v31 = vmul.f32 1.442695, %v736_v30 }
 0x728   :  { %909 = vpow2.f32 %v737_v31 }
 0x735   :  { %v910_v32 = vpop.eup %909 }
 0x736   :  { %v739_v33 = vadd.f32 1.0, %v910_v32 }
 0x738   :  { %911 = vrcp.f32 %v739_v33 }
 0x745   :  { %v912_v34 = vpop.eup %911 }
 0x746   :  { %v742_v35 = vsub.f32 1.0, %v912_v34 }
 0x748   :  { %v743_v36 = vsel %vm741_vm6, %v912_v34, %v742_v35 }
 0x749   :  { %v744_v37 = vsub.f32 1.0, %v743_v36 }
 0x74b   :  { %746 = vrot.lane.b32.xlu0 %v744_v37, %s1118_s14 }
 0x7bd   :  { %v747_v38 = vpop.permute.xlu0 %746 }
 0x7be   :  { %750 = vst.msk [vmem:[%s1352_s17] sm:$0xff] %vm749_vm7, %v747_v38 }
 0x7bf   :  { %752 = vst.msk [vmem:[%s1352_s17] sm:$0xff] %vm751_vm8, %v743_v36 }
 0x7c0   :  { %757 = vsyncpa [#allocation3], 1 }
 0x7c1   :  { %758 = vsyncpa [#allocation5], 1 }
 0x7c2   :  { %759 = vsyncpa [#allocation8], 1 }
 0x7c3   :  { %760 = vsyncpa [#allocation11], 1 }
 0x7c4   :  { %761 = vsyncpa [#allocation14], 1 }

</bundles_post_ra>
